<compile_context>
chip_gen: v5e
topology: v5e:2x2
jax: 0.10.0
libtpu: 0.0.40
codegen_flags: <defaults>
</compile_context>

<pallas_src>
import jax
import jax.numpy as jnp
from jax.experimental import pallas as pl
from jax.experimental.pallas import tpu as pltpu  # noqa: F401  (kept for TPU-specific tuning hooks)

# ----------------------------- model sizes -----------------------------------
B = 2          # batch
L = 2048       # waveform samples
WIN = 128      # frame length (== hop, non-overlapping framing)
T = L // WIN   # number of frames (time steps)            -> 16
F = 32         # feature_extractor output channels
H = 32         # conv_extractor output channels
D = 32         # encoder output dim
K = 3          # conv kernel size (same padding)


# ------------------------------- kernel ---------------------------------------
def beeyol_kernel(x_ref,        # (B*T, 3*WIN)  [prev | cur | next] frame windows
                  w_comp_ref,   # (3*WIN, H)    composed feature+conv weight
                  bias_ref,     # (B*T, H)      composed per-row bias (boundary-corrected)
                  w_enc_ref,    # (H, D)
                  b_enc_ref,    # (1, D)
                  out_ref):     # (B*T, D)
    # fused feature_extractor + conv_extractor: one wide-K matmul + ReLU
    y = jnp.dot(x_ref[...], w_comp_ref[...],
                preferred_element_type=jnp.float32) + bias_ref[...]
    y = jnp.maximum(y, 0.0)

    # encoder: Linear + GELU
    z = jnp.dot(y, w_enc_ref[...],
                preferred_element_type=jnp.float32) + b_enc_ref[...]
    # TODO(synk): PyTorch nn.GELU defaults to exact erf; tanh approximation kept
    # here (and in the reference) for robust Mosaic lowering.
    z = jax.nn.gelu(z)

    out_ref[...] = z.astype(out_ref.dtype)


# ------------------------------- wrapper ---------------------------------------
def beeyol_forward(wavs, params):
    """wavs: (B, L) float32 -> returns [feats] with feats: (B, T, D)."""
    w_feat, b_feat, w_conv, b_conv, w_enc, b_enc = params

    # --- glue: framing + 3-tap window construction (pure data movement) --------
    frames = wavs.reshape(B, T, WIN)                                   # (B, T, WIN)
    zero_frame = jnp.zeros((B, 1, WIN), dtype=frames.dtype)
    prev = jnp.concatenate([zero_frame, frames[:, :-1]], axis=1)       # frame t-1
    nxt = jnp.concatenate([frames[:, 1:], zero_frame], axis=1)         # frame t+1
    frames3 = jnp.concatenate([prev, frames, nxt], axis=-1)            # (B, T, 3*WIN)
    frames3 = frames3.reshape(B * T, 3 * WIN)                          # (B*T, 384)

    # --- host-side weight composition (feature_extractor folded into conv) -----
    w_comp = jnp.concatenate(
        [w_feat @ w_conv[0], w_feat @ w_conv[1], w_feat @ w_conv[2]], axis=0)  # (3*WIN, H)

    # per-row bias: b_conv + b_feat@Wc1 always; b_feat@Wc0 only for t>0,
    # b_feat@Wc2 only for t<T-1 (zero-padded taps contribute exactly 0).
    tap0 = b_feat @ w_conv[0]                                          # (1, H)
    tap1 = b_feat @ w_conv[1]                                          # (1, H)
    tap2 = b_feat @ w_conv[2]                                          # (1, H)
    t_idx = jnp.arange(T)
    bias_t = (b_conv + tap1
              + jnp.where((t_idx > 0)[:, None], tap0, 0.0)
              + jnp.where((t_idx < T - 1)[:, None], tap2, 0.0))        # (T, H)
    bias_rows = jnp.tile(bias_t, (B, 1)).astype(jnp.float32)           # (B*T, H)

    # --- single grid-less fused kernel: everything fits in VMEM ----------------
    feats_flat = pl.pallas_call(
        beeyol_kernel,
        out_shape=jax.ShapeDtypeStruct((B * T, D), jnp.float32),
    )(frames3, w_comp, bias_rows, w_enc, b_enc)

    return [feats_flat.reshape(B, T, D)]


# ---------------------------- pure-JAX reference --------------------------------
def beeyol_reference(wavs, params):
    w_feat, b_feat, w_conv, b_conv, w_enc, b_enc = params
    frames = wavs.reshape(B, T, WIN)
    feat = jnp.einsum("btw,wf->btf", frames, w_feat) + b_feat            # (B, T, F)
    zeros = jnp.zeros((B, 1, F), dtype=feat.dtype)
    prev = jnp.concatenate([zeros, feat[:, :-1, :]], axis=1)
    nxt = jnp.concatenate([feat[:, 1:, :], zeros], axis=1)
    y = (jnp.einsum("btf,fh->bth", prev, w_conv[0])
         + jnp.einsum("btf,fh->bth", feat, w_conv[1])
         + jnp.einsum("btf,fh->bth", nxt, w_conv[2]) + b_conv)
    y = jnp.maximum(y, 0.0)
    z = jax.nn.gelu(jnp.einsum("bth,hd->btd", y, w_enc) + b_enc)
    return [z]


# --------------------------------- main ------------------------------------------
if __name__ == "__main__":
    key = jax.random.PRNGKey(0)
    k_wav, k_wf, k_wc, k_we, k_bf, k_bc, k_be = jax.random.split(key, 7)

    wavs = jax.random.normal(k_wav, (B, L), dtype=jnp.float32)

    params = (
        jax.random.normal(k_wf, (WIN, F), dtype=jnp.float32) * 0.05,   # w_feat
        jax.random.normal(k_bf, (1, F), dtype=jnp.float32) * 0.01,     # b_feat
        jax.random.normal(k_wc, (K, F, H), dtype=jnp.float32) * 0.05,  # w_conv
        jax.random.normal(k_bc, (1, H), dtype=jnp.float32) * 0.01,     # b_conv
        jax.random.normal(k_we, (H, D), dtype=jnp.float32) * 0.05,     # w_enc
        jax.random.normal(k_be, (1, D), dtype=jnp.float32) * 0.01,     # b_enc
    )

    out = beeyol_forward(wavs, params)
    feats = jax.block_until_ready(out[0])

    ref = beeyol_reference(wavs, params)[0]
    assert feats.shape == (B, T, D), feats.shape
    assert jnp.allclose(feats, ref, atol=1e-4, rtol=1e-4), "mismatch vs reference"

    print("KERNEL_OK")
</pallas_src>

<mosaic_0001>
module attributes {stable_mosaic.version = 11 : i64} {
  func.func @beeyol_kernel(%arg0: memref<32x384xf32, #tpu.memory_space<vmem>>, %arg1: memref<384x32xf32, #tpu.memory_space<vmem>>, %arg2: memref<32x32xf32, #tpu.memory_space<vmem>>, %arg3: memref<32x32xf32, #tpu.memory_space<vmem>>, %arg4: memref<1x32xf32, #tpu.memory_space<vmem>>, %arg5: memref<32x32xf32, #tpu.memory_space<vmem>>) attributes {dimension_semantics = [], scalar_prefetch = 0 : i64, scratch_operands = 0 : i64, tpu.core_type = #tpu.core_type<tc>} {
    %c0 = arith.constant 0 : index
    %c0_0 = arith.constant 0 : index
    %0 = vector.load %arg0[%c0, %c0_0] : memref<32x384xf32, #tpu.memory_space<vmem>>, vector<32x384xf32>
    %c0_1 = arith.constant 0 : index
    %c0_2 = arith.constant 0 : index
    %1 = vector.load %arg1[%c0_1, %c0_2] : memref<384x32xf32, #tpu.memory_space<vmem>>, vector<384x32xf32>
    %cst = arith.constant dense<0.000000e+00> : vector<32x32xf32>
    %2 = tpu.matmul %0, %1, %cst {dimension_numbers = #tpu.dot_dimension_numbers<[1], [0], [0], [1], [0, 0, 1, 1], [], []>} : vector<32x384xf32>, vector<384x32xf32>, vector<32x32xf32> -> vector<32x32xf32>
    %c0_3 = arith.constant 0 : index
    %c0_4 = arith.constant 0 : index
    %3 = vector.load %arg2[%c0_3, %c0_4] : memref<32x32xf32, #tpu.memory_space<vmem>>, vector<32x32xf32>
    %4 = arith.addf %2, %3 : vector<32x32xf32>
    %cst_5 = arith.constant 0.000000e+00 : f32
    %5 = vector.broadcast %cst_5 : f32 to vector<32x32xf32>
    %6 = arith.maximumf %4, %5 : vector<32x32xf32>
    %c0_6 = arith.constant 0 : index
    %c0_7 = arith.constant 0 : index
    %7 = vector.load %arg3[%c0_6, %c0_7] : memref<32x32xf32, #tpu.memory_space<vmem>>, vector<32x32xf32>
    %cst_8 = arith.constant dense<0.000000e+00> : vector<32x32xf32>
    %8 = tpu.matmul %6, %7, %cst_8 {dimension_numbers = #tpu.dot_dimension_numbers<[1], [0], [0], [1], [0, 0, 1, 1], [], []>} : vector<32x32xf32>, vector<32x32xf32>, vector<32x32xf32> -> vector<32x32xf32>
    %c0_9 = arith.constant 0 : index
    %c0_10 = arith.constant 0 : index
    %9 = vector.load %arg4[%c0_9, %c0_10] : memref<1x32xf32, #tpu.memory_space<vmem>>, vector<1x32xf32>
    %10 = vector.broadcast %9 : vector<1x32xf32> to vector<32x32xf32>
    %11 = arith.addf %8, %10 : vector<32x32xf32>
    %12 = arith.mulf %11, %11 : vector<32x32xf32>
    %13 = arith.mulf %11, %12 : vector<32x32xf32>
    %cst_11 = arith.constant 4.471500e-02 : f32
    %14 = vector.broadcast %cst_11 : f32 to vector<32x32xf32>
    %15 = arith.mulf %14, %13 : vector<32x32xf32>
    %16 = arith.addf %11, %15 : vector<32x32xf32>
    %cst_12 = arith.constant 0.797884583 : f32
    %17 = vector.broadcast %cst_12 : f32 to vector<32x32xf32>
    %18 = arith.mulf %17, %16 : vector<32x32xf32>
    %19 = math.tanh %18 : vector<32x32xf32>
    %cst_13 = arith.constant 1.000000e+00 : f32
    %20 = vector.broadcast %cst_13 : f32 to vector<32x32xf32>
    %21 = arith.addf %20, %19 : vector<32x32xf32>
    %cst_14 = arith.constant 5.000000e-01 : f32
    %22 = vector.broadcast %cst_14 : f32 to vector<32x32xf32>
    %23 = arith.mulf %22, %21 : vector<32x32xf32>
    %24 = arith.mulf %11, %23 : vector<32x32xf32>
    %c0_15 = arith.constant 0 : index
    %c0_16 = arith.constant 0 : index
    %25 = vector.load %arg5[%c0_15, %c0_16] : memref<32x32xf32, #tpu.memory_space<vmem>>, vector<32x32xf32>
    tpu.vector_store %arg5[%c0_15, %c0_16], %24 {strides = array<i32>} : memref<32x32xf32, #tpu.memory_space<vmem>>, vector<32x32xf32>,
    return
  }
}

</mosaic_0001>

<bundles_post_ra>
// kernel: tpu_custom_call.1
= control target key start
LH: loop header
LB: loop body
LE: loop exit
PB: predicated region body
PF: predicated region fallthrough
CT: control target
= control target key end

     0   :  { %s577_s0 = inlined_call_operand.vmem [shape: f32[32,384], index: 0, kind: input, shape index: {}]   ;;  %s578_s1 = inlined_call_operand.vmem [shape: f32[384,32], index: 1, kind: input, shape index: {}]   ;;  %s579_s2 = inlined_call_operand.vmem [shape: f32[32,32], index: 2, kind: input, shape index: {}]   ;;  %s580_s3 = inlined_call_operand.vmem [shape: f32[32,32], index: 3, kind: input, shape index: {}]   ;;  %s581_s4 = inlined_call_operand.vmem [shape: f32[1,32], index: 4, kind: input, shape index: {}]   ;;  %s582_s5 = inlined_call_operand.hbm [shape: f32[32,32], index: 5, kind: output, shape index: {}]  }
   0x1   :  { %v80_v0 = vld [vmem:[%s578_s1 + $0x178] sm:$0xff]  ;;  %v79_v2 = vld [vmem:[%s578_s1 + $0x170] sm:$0xff]  ;;  %v78_v5 = vld [vmem:[%s578_s1 + $0x168] sm:$0xff] }
   0x2   :  { %v48_v1 = vld [vmem:[%s578_s1 + $0x78] sm:$0xff]  ;;  %143 = vmatpush.msra.mxu2 %v80_v0  ;;  %v47_v3 = vld [vmem:[%s578_s1 + $0x70] sm:$0xff]  ;;  %v46_v6 = vld [vmem:[%s578_s1 + $0x68] sm:$0xff] }
   0x3   :  { %85 = vmatpush.msra.mxu0 %v48_v1  ;;  %v64_v4 = vld [vmem:[%s578_s1 + $0xf8] sm:$0xff]  ;;  %v63_v7 = vld [vmem:[%s578_s1 + $0xf0] sm:$0xff]  ;;  %v62_v8 = vld [vmem:[%s578_s1 + $0xe8] sm:$0xff] }
   0x4   :  { %114 = vmatpush.msra.mxu1 %v64_v4  ;;  %144 = vmatpush.msra.mxu2 %v79_v2  ;;  %v77_v9 = vld [vmem:[%s578_s1 + $0x160] sm:$0xff]  ;;  %v76_v12 = vld [vmem:[%s578_s1 + $0x158] sm:$0xff]  ;;  %v75_v15 = vld [vmem:[%s578_s1 + $0x150] sm:$0xff] }
   0x5   :  { %86 = vmatpush.msra.mxu0 %v47_v3  ;;  %v45_v10 = vld [vmem:[%s578_s1 + $0x60] sm:$0xff]  ;;  %v44_v13 = vld [vmem:[%s578_s1 + $0x58] sm:$0xff]  ;;  %v43_v16 = vld [vmem:[%s578_s1 + $0x50] sm:$0xff] }
   0x6   :  { %115 = vmatpush.msra.mxu1 %v63_v7  ;;  %145 = vmatpush.msra.mxu2 %v78_v5  ;;  %v61_v11 = vld [vmem:[%s578_s1 + $0xe0] sm:$0xff]  ;;  %v60_v14 = vld [vmem:[%s578_s1 + $0xd8] sm:$0xff]  ;;  %v59_v17 = vld [vmem:[%s578_s1 + $0xd0] sm:$0xff] }
   0x7   :  { %87 = vmatpush.msra.mxu0 %v46_v6  ;;  %v74_v18 = vld [vmem:[%s578_s1 + $0x148] sm:$0xff]  ;;  %v73_v21 = vld [vmem:[%s578_s1 + $0x140] sm:$0xff]  ;;  %v72_v24 = vld [vmem:[%s578_s1 + $0x138] sm:$0xff] }
   0x8   :  { %116 = vmatpush.msra.mxu1 %v62_v8  ;;  %146 = vmatpush.msra.mxu2 %v77_v9  ;;  %v42_v19 = vld [vmem:[%s578_s1 + $0x48] sm:$0xff]  ;;  %v41_v22 = vld [vmem:[%s578_s1 + $0x40] sm:$0xff]  ;;  %v40_v25 = vld [vmem:[%s578_s1 + $0x38] sm:$0xff] }
   0x9   :  { %88 = vmatpush.msra.mxu0 %v45_v10  ;;  %v58_v20 = vld [vmem:[%s578_s1 + $0xc8] sm:$0xff]  ;;  %v57_v23 = vld [vmem:[%s578_s1 + $0xc0] sm:$0xff]  ;;  %v56_v26 = vld [vmem:[%s578_s1 + $0xb8] sm:$0xff] }
   0xa   :  { %117 = vmatpush.msra.mxu1 %v61_v11  ;;  %147 = vmatpush.msra.mxu2 %v76_v12  ;;  %v71_v27 = vld [vmem:[%s578_s1 + $0x130] sm:$0xff]  ;;  %v70_v30 = vld [vmem:[%s578_s1 + $0x128] sm:$0xff] }
   0xb   :  { %89 = vmatpush.msra.mxu0 %v44_v13  ;;  %v39_v28 = vld [vmem:[%s578_s1 + $0x30] sm:$0xff]  ;;  %v38_v31 = vld [vmem:[%s578_s1 + $0x28] sm:$0xff] }
   0xc   :  { %118 = vmatpush.msra.mxu1 %v60_v14  ;;  %148 = vmatpush.msra.mxu2 %v75_v15  ;;  %v55_v29 = vld [vmem:[%s578_s1 + $0xb0] sm:$0xff]  ;;  %v54_v32 = vld [vmem:[%s578_s1 + $0xa8] sm:$0xff] }
   0xd   :  { %90 = vmatpush.msra.mxu0 %v43_v16 }
   0xe   :  { %119 = vmatpush.msra.mxu1 %v59_v17  ;;  %149 = vmatpush.msra.mxu2 %v74_v18 }
   0xf   :  { %91 = vmatpush.msra.mxu0 %v42_v19 }
  0x10   :  { %120 = vmatpush.msra.mxu1 %v58_v20  ;;  %150 = vmatpush.msra.mxu2 %v73_v21 }
  0x11   :  { %92 = vmatpush.msra.mxu0 %v41_v22 }
  0x12   :  { %121 = vmatpush.msra.mxu1 %v57_v23  ;;  %151 = vmatpush.msra.mxu2 %v72_v24 }
  0x13   :  { %93 = vmatpush.msra.mxu0 %v40_v25 }
  0x14   :  { %122 = vmatpush.msra.mxu1 %v56_v26  ;;  %152 = vmatpush.msra.mxu2 %v71_v27 }
  0x15   :  { %94 = vmatpush.msra.mxu0 %v39_v28 }
  0x16   :  { %10 = vsyncpa [#allocation3], 0  ;;  %123 = vmatpush.msra.mxu1 %v55_v29  ;;  %v69_v33 = vld [vmem:[%s578_s1 + $0x120] sm:$0xff]  ;;  %153 = vmatpush.msra.mxu2 %v70_v30  ;;  %v68_v36 = vld [vmem:[%s578_s1 + $0x118] sm:$0xff]  ;;  %vm184_vm0 = vcmask 261120   ;;  %s272_s29 = sshll.u32 %s582_s5, 4  ;;  %s273_s29 = int_to_ptr.hbm [resolvable:$true] %s272_s29 }
  0x17   :  { %v37_v34 = vld [vmem:[%s578_s1 + $0x20] sm:$0xff]  ;;  %95 = vmatpush.msra.mxu0 %v38_v31  ;;  %v36_v37 = vld [vmem:[%s578_s1 + $0x18] sm:$0xff]  ;;  %v67_v39 = vld [vmem:[%s578_s1 + $0x110] sm:$0xff]  ;;  %s327_s30 = smov 128   ;;  %s328_s6 = smov 8  }
  0x18   :  { %v53_v35 = vld [vmem:[%s578_s1 + $0xa0] sm:$0xff]  ;;  %124 = vmatpush.msra.mxu1 %v54_v32  ;;  %154 = vmatpush.msra.mxu2 %v69_v33  ;;  %v52_v38 = vld [vmem:[%s578_s1 + $0x98] sm:$0xff]  ;;  %v35_v40 = vld [vmem:[%s578_s1 + $0x10] sm:$0xff] }
  0x19   :  { %96 = vmatpush.msra.mxu0 %v37_v34  ;;  %v51_v41 = vld [vmem:[%s578_s1 + $0x90] sm:$0xff]  ;;  %v66_v42 = vld [vmem:[%s578_s1 + $0x108] sm:$0xff]  ;;  %v65_v45 = vld [vmem:[%s578_s1 + $0x100] sm:$0xff] }
  0x1a   :  { %125 = vmatpush.msra.mxu1 %v53_v35  ;;  %155 = vmatpush.msra.mxu2 %v68_v36  ;;  %v34_v43 = vld [vmem:[%s578_s1 + $0x8] sm:$0xff]  ;;  %v33_v46 = vld [vmem:[%s578_s1] sm:$0xff]  ;;  %v23_v47 = vld [vmem:[%s577_s0 + $0x10] sm:$0xff] }
  0x1b   :  { %97 = vmatpush.msra.mxu0 %v36_v37  ;;  %v50_v44 = vld [vmem:[%s578_s1 + $0x88] sm:$0xff]  ;;  %v21_v48 = vld [vmem:[%s577_s0] sm:$0xff]  ;;  %v24_v52 = vld [vmem:[%s577_s0 + $0x18] sm:$0xff] }
  0x1c   :  { %126 = vmatpush.msra.mxu1 %v52_v38  ;;  %156 = vmatpush.msra.mxu2 %v67_v39  ;;  %v49_v49 = vld [vmem:[%s578_s1 + $0x80] sm:$0xff]  ;;  %v22_v50 = vld [vmem:[%s577_s0 + $0x8] sm:$0xff]  ;;  %v27_v55 = vld [vmem:[%s577_s0 + $0x30] sm:$0xff] }
  0x1d   :  { %98 = vmatpush.msra.mxu0 %v35_v40  ;;  %v26_v51 = vld [vmem:[%s577_s0 + $0x28] sm:$0xff]  ;;  %v25_v53 = vld [vmem:[%s577_s0 + $0x20] sm:$0xff]  ;;  %v28_v56 = vld [vmem:[%s577_s0 + $0x38] sm:$0xff] }
  0x1e   :  { %127 = vmatpush.msra.mxu1 %v51_v41  ;;  %157 = vmatpush.msra.mxu2 %v66_v42  ;;  %v29_v54 = vld [vmem:[%s577_s0 + $0x40] sm:$0xff]  ;;  %v32_v57 = vld [vmem:[%s577_s0 + $0x58] sm:$0xff]  ;;  %v30_v58 = vld [vmem:[%s577_s0 + $0x48] sm:$0xff] }
  0x1f   :  { %99 = vmatpush.msra.mxu0 %v34_v43  ;;  %v31_v59 = vld [vmem:[%s577_s0 + $0x50] sm:$0xff]  ;;  %v179_v60 = vld [vmem:[%s580_s3 + $0x18] sm:$0xff]  ;;  %v177_v62 = vld [vmem:[%s580_s3 + $0x8] sm:$0xff] }
  0x20   :  { %128 = vmatpush.msra.mxu1 %v50_v44  ;;  %158 = vmatpush.msra.mxu2 %v65_v45  ;;  %v178_v61 = vld [vmem:[%s580_s3 + $0x10] sm:$0xff]  ;;  %v176_v63 = vld [vmem:[%s580_s3] sm:$0xff]  ;;  %v82_v6 = vld [vmem:[%s579_s2 + $0x8] sm:$0xff] }
  0x21   :  { %100 = vmatpush.msra.mxu0 %v33_v46  ;;  %159 = vmatmul.f32.vlgmr.msra.gmra.mxu2 %v23_v47  ;;  %v81_v0 = vld [vmem:[%s579_s2] sm:$0xff]  ;;  %v83_v14 = vld [vmem:[%s579_s2 + $0x10] sm:$0xff]  ;;  %v84_v22 = vld [vmem:[%s579_s2 + $0x18] sm:$0xff]  ;;  %s326_s2 = smov [#allocation2]  }
  0x22   :  { %101 = vmatmul.f32.vlgmr.msra.gmra.mxu0 %v21_v48  ;;  %129 = vmatpush.msra.mxu1 %v49_v49  ;;  %v291_v32 = vld [vmem:[%s581_s4] ss:$0 sm:$0xff]  ;;  %s270_s4 = sshll.u32 %s326_s2, 4  ;;  %s271_s4 = int_to_ptr.vmem [resolvable:$true] %s270_s4 }
  0x23   :  { %130 = vmatmul.f32.vlgmr.msra.gmra.mxu1 %v22_v50  ;;  %209 = vmatpush.msra.mxu3 %v179_v60 }
  0x25   :  { %210 = vmatpush.msra.mxu3 %v178_v61 }
  0x27   :  { %211 = vmatpush.msra.mxu3 %v177_v62 }
  0x29   :  { %162 = vmatmul.f32.gmra.mxu2 %v26_v51  ;;  %212 = vmatpush.msra.mxu3 %v176_v63 }
  0x2a   :  { %104 = vmatmul.f32.gmra.mxu0 %v24_v52 }
  0x2b   :  { %133 = vmatmul.f32.gmra.mxu1 %v25_v53 }
  0x31   :  { %165 = vmatmul.f32.gmra.mxu2 %v29_v54 }
  0x32   :  { %107 = vmatmul.f32.gmra.mxu0 %v27_v55 }
  0x33   :  { %136 = vmatmul.f32.gmra.mxu1 %v28_v56 }
  0x39   :  { %168 = vmatmul.f32.gmra.mxu2 %v32_v57 }
  0x3a   :  { %110 = vmatmul.f32.gmra.mxu0 %v30_v58 }
  0x3b   :  { %139 = vmatmul.f32.gmra.mxu1 %v31_v59 }
  0x9f   :  { %v102_v1 = vpop.f32.mrf.mxu0 }
  0xa0   :  { %v103_v2 = vadd.f32 %v102_v1, %v81_v0  ;;  %v131_v3 = vpop.f32.mrf.mxu1 }
  0xa2   :  { %v132_v4 = vadd.f32 %v131_v3, %v103_v2 }
  0xa4   :  { %v160_v5 = vpop.f32.mrf.mxu2 }
  0xa5   :  { %v161_v7 = vadd.f32 %v160_v5, %v132_v4 }
  0xa7   :  { %v105_v8 = vpop.f32.mrf.mxu0  ;;  %v172_v9 = vmax.f32 %v161_v7, 0.0 }
  0xa8   :  { %v106_v10 = vadd.f32 %v105_v8, %v82_v6  ;;  %v134_v11 = vpop.f32.mrf.mxu1 }
  0xa9   :  { %284 = vmatmul.msk.f32.vlgmr.msra.gmra.mxu3 %vm184_vm0, %v172_v9 }
  0xaa   :  { %v135_v12 = vadd.f32 %v134_v11, %v106_v10 }
  0xac   :  { %v163_v13 = vpop.f32.mrf.mxu2 }
  0xad   :  { %v164_v15 = vadd.f32 %v163_v13, %v135_v12 }
  0xaf   :  { %v108_v16 = vpop.f32.mrf.mxu0  ;;  %v173_v17 = vmax.f32 %v164_v15, 0.0 }
  0xb0   :  { %v109_v18 = vadd.f32 %v108_v16, %v83_v14  ;;  %v137_v19 = vpop.f32.mrf.mxu1 }
  0xb1   :  { %285 = vmatmul.msk.f32.gmra.mxu3 %vm184_vm0, %v173_v17 }
  0xb2   :  { %v138_v20 = vadd.f32 %v137_v19, %v109_v18 }
  0xb4   :  { %v166_v21 = vpop.f32.mrf.mxu2 }
  0xb5   :  { %v167_v23 = vadd.f32 %v166_v21, %v138_v20 }
  0xb7   :  { %v111_v24 = vpop.f32.mrf.mxu0  ;;  %v174_v25 = vmax.f32 %v167_v23, 0.0 }
  0xb8   :  { %v112_v26 = vadd.f32 %v111_v24, %v84_v22  ;;  %v140_v27 = vpop.f32.mrf.mxu1 }
  0xb9   :  { %286 = vmatmul.msk.f32.gmra.mxu3 %vm184_vm0, %v174_v25 }
  0xba   :  { %v141_v28 = vadd.f32 %v140_v27, %v112_v26 }
  0xbc   :  { %v169_v29 = vpop.f32.mrf.mxu2 }
  0xbd   :  { %v170_v30 = vadd.f32 %v169_v29, %v141_v28 }
  0xbf   :  { %v175_v31 = vmax.f32 %v170_v30, 0.0 }
  0xc1   :  { %287 = vmatmul.msk.f32.gmra.mxu3 %vm184_vm0, %v175_v31 }
 0x12c   :  { %v214_v33 = vpop.f32.mrf.mxu3 }
 0x12d   :  { %v215_v34 = vadd.f32 %v291_v32, %v214_v33 }
 0x12f   :  { %v226_v35 = vmul.f32 %v215_v34, %v215_v34 }
 0x131   :  { %v230_v36 = vmul.f32 %v226_v35, %v215_v34 }
 0x133   :  { %v234_v37 = vmul.f32 0.044715, %v230_v36 }
 0x134   :  { %v217_v38 = vpop.f32.mrf.mxu3 }
 0x135   :  { %v238_v39 = vadd.f32 %v234_v37, %v215_v34  ;;  %v218_v40 = vadd.f32 %v291_v32, %v217_v38 }
 0x137   :  { %v242_v41 = vmul.f32 0.7978846, %v238_v39  ;;  %v227_v42 = vmul.f32 %v218_v40, %v218_v40 }
 0x139   :  { %292 = vtanh.f32 %v242_v41  ;;  %v231_v43 = vmul.f32 %v227_v42, %v218_v40 }
 0x13b   :  { %v235_v44 = vmul.f32 0.044715, %v231_v43 }
 0x13c   :  { %v220_v45 = vpop.f32.mrf.mxu3 }
 0x13d   :  { %v239_v46 = vadd.f32 %v235_v44, %v218_v40  ;;  %v221_v47 = vadd.f32 %v291_v32, %v220_v45 }
 0x13f   :  { %v293_v48 = vpop.eup %292  ;;  %v243_v49 = vmul.f32 0.7978846, %v239_v46  ;;  %v228_v50 = vmul.f32 %v221_v47, %v221_v47 }
 0x140   :  { %v250_v51 = vadd.f32 1.0, %v293_v48 }
 0x141   :  { %294 = vtanh.f32 %v243_v49  ;;  %v232_v52 = vmul.f32 %v228_v50, %v221_v47 }
 0x142   :  { %v254_v53 = vmul.f32 0.5, %v250_v51 }
 0x143   :  { %v236_v54 = vmul.f32 0.044715, %v232_v52 }
 0x144   :  { %v258_v55 = vmul.f32 %v254_v53, %v215_v34  ;;  %v223_v56 = vpop.f32.mrf.mxu3 }
 0x145   :  { %v240_v57 = vadd.f32 %v236_v54, %v221_v47  ;;  %v224_v58 = vadd.f32 %v291_v32, %v223_v56 }
 0x146   :  { %262 = vst.msk [vmem:[#allocation2] sm:$0xff] %vm184_vm0, %v258_v55 }
 0x147   :  { %v295_v59 = vpop.eup %294  ;;  %v244_v60 = vmul.f32 0.7978846, %v240_v57  ;;  %v229_v61 = vmul.f32 %v224_v58, %v224_v58 }
 0x148   :  { %v251_v62 = vadd.f32 1.0, %v295_v59 }
 0x149   :  { %296 = vtanh.f32 %v244_v60  ;;  %v233_v63 = vmul.f32 %v229_v61, %v224_v58 }
 0x14a   :  { %v255_v0 = vmul.f32 0.5, %v251_v62 }
 0x14b   :  { %v237_v1 = vmul.f32 0.044715, %v233_v63 }
 0x14c   :  { %v259_v2 = vmul.f32 %v255_v0, %v218_v40 }
 0x14d   :  { %v241_v3 = vadd.f32 %v237_v1, %v224_v58 }
 0x14e   :  { %263 = vst.msk [vmem:[#allocation2 + $0x8] sm:$0xff] %vm184_vm0, %v259_v2 }
 0x14f   :  { %v297_v4 = vpop.eup %296  ;;  %v245_v5 = vmul.f32 0.7978846, %v241_v3 }
 0x150   :  { %v252_v6 = vadd.f32 1.0, %v297_v4 }
 0x151   :  { %298 = vtanh.f32 %v245_v5 }
 0x152   :  { %v256_v7 = vmul.f32 0.5, %v252_v6 }
 0x154   :  { %v260_v8 = vmul.f32 %v256_v7, %v221_v47 }
 0x156   :  { %264 = vst.msk [vmem:[#allocation2 + $0x10] sm:$0xff] %vm184_vm0, %v260_v8 }
 0x157   :  { %v299_v9 = vpop.eup %298 }
 0x158   :  { %v253_v10 = vadd.f32 1.0, %v299_v9 }
 0x15a   :  { %v257_v11 = vmul.f32 0.5, %v253_v10 }
 0x15c   :  { %v261_v12 = vmul.f32 %v257_v11, %v224_v58 }
 0x15e   :  { %265 = vst.msk [vmem:[#allocation2 + $0x18] sm:$0xff] %vm184_vm0, %v261_v12 }
 0x15f   :  { %278 = dma.vmem_to_hbm [thread:$0]  %s271_s4, 512, %s273_s29, [#allocation3], %s327_s30, %s327_s30, %s328_s6  }
 0x160   :  { %324 = dma.done.wait [#allocation3], 512  }
 0x161   :  { %325 = vsyncadd [#allocation3], 4294966784 }
 0x162   :  { %283 = vsyncpa [#allocation3], 1 }

</bundles_post_ra>
